<compile_context>
chip_gen: v6e
topology: v6e:2x2x1
jax: 0.10.0
libtpu: 0.0.40
codegen_flags: <defaults>
</compile_context>

<pallas_src>
import functools

import jax
import jax.numpy as jnp
from jax import lax
from jax.experimental import pallas as pl
from jax.experimental.pallas import tpu as pltpu


def _round_up(x, m):
    return ((x + m - 1) // m) * m


def _vmem_capacity_bytes(default_bytes=64 * 2**20):
    """Best-effort VMEM capacity probe (v5e/v6e: 128 MiB, v7x: 64 MiB/TC)."""
    try:
        # Capability probe only; fall back to the smallest real capacity so the
        # derived budgets stay safe on every generation.
        cap = int(pltpu.get_tpu_info().vmem_capacity_bytes)
        if cap > 0:
            return cap
    except Exception:
        pass
    return default_bytes


def _lse_kernel(x_ref, o_ref):
    # Global, numerically-stable log-sum-exp over the (1, N_pad) logits row.
    x = x_ref[...]                                             # (1, N_pad) f32
    mx = jnp.max(x, axis=1, keepdims=True)                     # (1, 1)
    o_ref[...] = mx + jnp.log(jnp.sum(jnp.exp(x - mx), axis=1, keepdims=True))


def _focal_kernel(*refs, gamma, m_valid, tm, has_alpha):
    if has_alpha:
        lse_ref, x_ref, a_ref, t_ref, o_ref = refs
    else:
        lse_ref, x_ref, t_ref, o_ref = refs
        a_ref = None

    i = pl.program_id(0)
    t = t_ref[...]                                             # (TM, 1) int32
    x = x_ref[...]                                             # (1, N_pad) f32
    n_pad = x.shape[1]

    # Class-index iota as a single (1, N_pad) row; the compare broadcasts it
    # over the TM sublanes (no explicit (TM, N_pad) int32 iota).
    col = lax.broadcasted_iota(jnp.int32, (1, n_pad), 1)
    cmp = t == col                                             # (TM, N_pad) bool

    # Fused select-gather: no int->f32 convert, no multiply, pad-value safe.
    g_x = jnp.sum(jnp.where(cmp, x, 0.0), axis=1, keepdims=True)       # (TM, 1)

    logpt = g_x - lse_ref[...]                                 # gathered log_softmax
    pt = jnp.exp(logpt)                                        # pt from UN-scaled logpt (torch)
    base = 1.0 - pt
    if float(gamma).is_integer() and gamma >= 0:
        focal = base ** int(gamma)                             # 0**0 == 1, like torch
    else:
        focal = jnp.power(base, jnp.float32(gamma))

    if has_alpha:
        # Reuse the class compare for the alpha gather (alpha is zero-padded to
        # N_pad).  NOTE: targets >= len(alpha) get weight 0 here; PyTorch would
        # raise on such (invalid) inputs.
        g_a = jnp.sum(jnp.where(cmp, a_ref[...], 0.0), axis=1, keepdims=True)
        logpt = logpt * g_a

    loss = -focal * logpt                                      # (TM, 1)

    last = pl.num_programs(0) - 1

    @pl.when(i != last)
    def _():
        o_ref[0] = jnp.sum(loss, axis=0, keepdims=True)

    @pl.when(i == last)
    def _():
        # Only the last block can contain padded targets: mask them here only.
        row = lax.broadcasted_iota(jnp.int32, (tm, 1), 0) + i * tm
        masked = jnp.where(row < m_valid, loss, 0.0)
        o_ref[0] = jnp.sum(masked, axis=0, keepdims=True)


def _alpha_vector(alpha):
    # Mirrors FocalLoss.__init__ alpha handling.
    if alpha is None:
        return None
    if isinstance(alpha, (float, int)):
        return jnp.asarray([alpha, 1.0 - alpha], jnp.float32)
    return jnp.asarray(alpha, jnp.float32)


def focal_loss_pallas(inp, target, gamma=0.0, alpha=None, size_average=True,
                      tm=1024):
    x = jnp.ravel(inp).astype(jnp.float32)
    t = jnp.ravel(target).astype(jnp.int32)
    n = int(x.shape[0])
    m = int(t.shape[0])

    # Lane-pad logits with a large negative finite value: exp() underflows to 0
    # in the LSE and padded lanes are never selected by valid targets.
    n_pad = _round_up(max(n, 1), 128)
    x_pad = jnp.full((n_pad,), -1e30, jnp.float32).at[:n].set(x).reshape(1, n_pad)

    # Alpha table zero-padded to N_pad so the class compare can be reused.
    a_vec = _alpha_vector(alpha)
    has_alpha = a_vec is not None
    if has_alpha:
        a_vec = a_vec[:n_pad]
        a_full = (jnp.zeros((n_pad,), jnp.float32)
                  .at[: int(a_vec.shape[0])].set(a_vec).reshape(1, n_pad))

    # Generation-aware VMEM budget: ~46 MiB on v7x (64 MiB/TC), ~92 MiB on
    # v5e/v6e (128 MiB).  TM is capped so the ~3 Mosaic-materialised
    # (TM, N_pad) f32 temporaries of the gather stay inside half the budget.
    vmem_cap = _vmem_capacity_bytes()
    vmem_limit = max(16 << 20, min(int(0.72 * vmem_cap), vmem_cap - (8 << 20)))
    temp_budget = vmem_limit // 2
    tm_cap = max(8, (temp_budget // (3 * 4 * n_pad)) // 8 * 8)
    tm = max(8, (min(int(tm), tm_cap, _round_up(m, 8)) // 8) * 8)
    m_pad = _round_up(m, tm)
    num_blocks = m_pad // tm
    t_pad = jnp.zeros((m_pad,), jnp.int32).at[:m].set(t).reshape(m_pad, 1)

    cparams = pltpu.CompilerParams(
        dimension_semantics=("parallel",), vmem_limit_bytes=int(vmem_limit))

    # 1) Global log-sum-exp of the flattened logits (single-step kernel).
    lse = pl.pallas_call(
        _lse_kernel,
        out_shape=jax.ShapeDtypeStruct((1, 1), jnp.float32),
        grid=(1,),
        in_specs=[pl.BlockSpec((1, n_pad), lambda i: (0, 0))],
        out_specs=pl.BlockSpec((1, 1), lambda i: (0, 0)),
        compiler_params=cparams,
    )(x_pad)

    # 2) Per-target focal loss; per-block partial sums (parallel grid).
    kernel = functools.partial(
        _focal_kernel, gamma=float(gamma), m_valid=m, tm=tm, has_alpha=has_alpha)

    in_specs = [
        pl.BlockSpec((1, 1), lambda i: (0, 0)),                # lse (resident)
        pl.BlockSpec((1, n_pad), lambda i: (0, 0)),            # logits (resident)
    ]
    inputs = [lse, x_pad]
    if has_alpha:
        in_specs.append(pl.BlockSpec((1, n_pad), lambda i: (0, 0)))   # alpha table
        inputs.append(a_full)
    in_specs.append(pl.BlockSpec((tm, 1), lambda i: (i, 0)))          # target block
    inputs.append(t_pad)

    partials = pl.pallas_call(
        kernel,
        out_shape=jax.ShapeDtypeStruct((num_blocks, 1, 1), jnp.float32),
        grid=(num_blocks,),
        in_specs=in_specs,
        out_specs=pl.BlockSpec((1, 1, 1), lambda i: (i, 0, 0)),
        compiler_params=cparams,
    )(*inputs)

    total = jnp.sum(partials)
    if size_average:
        total = total / jnp.float32(m)
    return total


def focal_loss_ref(inp, target, gamma=0.0, alpha=None, size_average=True):
    # Pure-JAX reference matching the PyTorch forward exactly.
    x = jnp.reshape(inp, (1, -1)).astype(jnp.float32)
    t = jnp.reshape(target, (-1,)).astype(jnp.int32)
    logpt = jax.nn.log_softmax(x, axis=1)[0][t]
    pt = jnp.exp(logpt)
    a_vec = _alpha_vector(alpha)
    if a_vec is not None:
        logpt = logpt * a_vec[t]
    loss = -((1.0 - pt) ** gamma) * logpt
    return jnp.mean(loss) if size_average else jnp.sum(loss)


if __name__ == "__main__":
    key = jax.random.PRNGKey(0)
    kx, kt = jax.random.split(key)
    # Deterministic synthetic inputs (no checkpoint loading).
    x = jax.random.normal(kx, (2, 4, 16, 16), jnp.float32)          # logits
    t = jax.random.randint(kt, (2, 4, 16, 16), 0, 2, jnp.int32)     # binary-style targets

    configs = [
        dict(gamma=0.0, alpha=None, size_average=True),   # module defaults (no-alpha path)
        dict(gamma=2.0, alpha=0.25, size_average=True),   # scalar alpha -> [a, 1-a]
        dict(gamma=2.0, alpha=[0.3, 0.7], size_average=False),
    ]
    for cfg in configs:
        out = focal_loss_pallas(x, t, **cfg)
        jax.block_until_ready(out)
        ref = focal_loss_ref(x, t, **cfg)
        assert jnp.allclose(out, ref, rtol=1e-4, atol=1e-5), (cfg, float(out), float(ref))
    print("KERNEL_OK")
</pallas_src>

<mosaic_0001>
module attributes {stable_mosaic.version = 11 : i64} {
  func.func @_lse_kernel(%arg0: i32, %arg1: memref<1x2048xf32, #tpu.memory_space<vmem>>, %arg2: memref<1x1xf32, #tpu.memory_space<vmem>>) attributes {dimension_semantics = [#tpu.dimension_semantics<parallel>], iteration_bounds = array<i64: 1>, scalar_prefetch = 0 : i64, scratch_operands = 0 : i64, tpu.core_type = #tpu.core_type<tc>, window_params = [{pipeline_mode = #tpu.pipeline_mode<synchronous>, transform_indices = @transform_0, window_bounds = array<i64: 1, 2048>}, {pipeline_mode = #tpu.pipeline_mode<synchronous>, transform_indices = @transform_1, window_bounds = array<i64: 1, 1>}]} {
    %c0 = arith.constant 0 : index
    %c0_0 = arith.constant 0 : index
    %0 = vector.load %arg1[%c0, %c0_0] : memref<1x2048xf32, #tpu.memory_space<vmem>>, vector<1x2048xf32>
    %cst = arith.constant dense<0xFF800000> : vector<1xf32>
    %1 = vector.multi_reduction <maximumf>, %0, %cst [1] : vector<1x2048xf32> to vector<1xf32>
    %2 = vector.shape_cast %1 : vector<1xf32> to vector<1x1xf32>
    %3 = vector.broadcast %2 : vector<1x1xf32> to vector<1x2048xf32>
    %4 = arith.subf %0, %3 : vector<1x2048xf32>
    %5 = math.exp %4 : vector<1x2048xf32>
    %cst_1 = arith.constant dense<0.000000e+00> : vector<1xf32>
    %6 = vector.multi_reduction <add>, %5, %cst_1 [1] : vector<1x2048xf32> to vector<1xf32>
    %7 = vector.shape_cast %6 : vector<1xf32> to vector<1x1xf32>
    %8 = math.log %7 : vector<1x1xf32>
    %9 = arith.addf %2, %8 : vector<1x1xf32>
    %c0_2 = arith.constant 0 : index
    %c0_3 = arith.constant 0 : index
    %10 = vector.load %arg2[%c0_2, %c0_3] : memref<1x1xf32, #tpu.memory_space<vmem>>, vector<1x1xf32>
    tpu.vector_store %arg2[%c0_2, %c0_3], %9 {strides = array<i32>} : memref<1x1xf32, #tpu.memory_space<vmem>>, vector<1x1xf32>,
    return
  }
  func.func @transform_0(%arg0: i32) -> (i32, i32) {
    %c0_i32 = arith.constant 0 : i32
    %c0_i32_0 = arith.constant 0 : i32
    %c0_i32_1 = arith.constant 0 : i32
    return %c0_i32, %c0_i32_0 : i32, i32
  }
  func.func @transform_1(%arg0: i32) -> (i32, i32) {
    %c0_i32 = arith.constant 0 : i32
    %c0_i32_0 = arith.constant 0 : i32
    %c0_i32_1 = arith.constant 0 : i32
    return %c0_i32, %c0_i32_0 : i32, i32
  }
}

</mosaic_0001>

<bundles_post_ra>
// kernel: tpu_custom_call.1
= control target key start
LH: loop header
LB: loop body
LE: loop exit
PB: predicated region body
PF: predicated region fallthrough
CT: control target
= control target key end

     0   :  { %6 = vsyncpa [#allocation3], 0  ;;  %s441_s0 = inlined_call_operand.hbm [shape: f32[1,2048], index: 0, kind: input, shape index: {}]   ;;  %s442_s1 = inlined_call_operand.hbm [shape: f32[1,1], index: 1, kind: output, shape index: {}]  }
   0x1   :  { %7 = vsyncpa [#allocation4], 0  ;;  %s338_s6 = smov [#allocation2]  }
   0x2   :  { %s14_s7 = sshll.u32 %s338_s6, 4  ;;  %s15_s7 = int_to_ptr.vmem [resolvable:$true] %s14_s7 }
   0x3   :  { %s302_s8 = scalar_lea.vmem %s15_s7, 256  ;;  %p307_p1 = scmp.lt.s32.totalorder %s15_s7, %s15_s7 }
   0x4   :  { %p303_p0 = scmp.ne.s32.totalorder %s15_s7, %s302_s8  ;;  %p308_p2 = scmp.lt.s32.totalorder %s302_s8, %s302_s8 }
   0x6   :  { %p309_p3 = por %p308_p2, %p307_p1 }
   0x8   :  { %p310_p4 = pnand %p309_p3, %p303_p0 }
   0xa   :  { %313 = shalt.err (!%p310_p4)
}
   0xb   :  { %17 = dma.hbm_to_vmem [thread:$0]  %s441_s0, 256, %s15_s7, [#allocation3]  }
   0xc   :  { %334 = dma.done.wait [#allocation3], 256  }
   0xd   :  { %335 = vsyncadd [#allocation3], 4294967040  ;;  %v25_v0 = vlaneseq  ;;  %v21_v10 = vld [vmem:[#allocation2] sm:$0xff]  ;;  %v22_v11 = vld [vmem:[#allocation2 + $0x8] sm:$0xff]  ;;  %vm105_vm0 = vcmask 1040384   ;;  %s339_s0 = smov [#allocation5]  }
   0xe   :  { %s277_s11 = sshll.u32 %s339_s0, 4  ;;  %vm269_vm1 = vcmask 0   ;;  %s278_s11 = int_to_ptr.vmem [resolvable:$true] %s277_s11 }
   0xf   :  { %v26_v1 = vshrl.u32 %v25_v0, 7  ;;  %s314_s12 = scalar_lea.vmem %s278_s11, 16  ;;  %s318_s13 = scalar_lea.vmem %s278_s11, 32 }
  0x10   :  { %p315_p5 = scmp.ne.s32.totalorder %s278_s11, %s314_s12  ;;  %p319_p6 = scmp.lt.s32.totalorder %s278_s11, %s278_s11 }
  0x11   :  { %v353_v2 = vsub.s32 0, %v26_v1  ;;  %v355_v3 = vsub.s32 1, %v26_v1  ;;  %v357_v4 = vsub.s32 2, %v26_v1  ;;  %v359_v5 = vsub.s32 3, %v26_v1  ;;  %p320_p7 = scmp.lt.s32.totalorder %s318_s13, %s314_s12 }
  0x12   :  { %v361_v6 = vsub.s32 4, %v26_v1  ;;  %v363_v7 = vsub.s32 5, %v26_v1  ;;  %v365_v8 = vsub.s32 6, %v26_v1  ;;  %v367_v9 = vsub.s32 7, %v26_v1 }
  0x13   :  { %v28_v12 = vrot.slane %v21_v10, %v353_v2  ;;  %v32_v13 = vrot.slane %v21_v10, %v355_v3  ;;  %v36_v14 = vrot.slane %v21_v10, %v357_v4  ;;  %v40_v15 = vrot.slane %v21_v10, %v359_v5  ;;  %p321_p8 = por %p320_p7, %p319_p6 }
  0x14   :  { %v44_v16 = vrot.slane %v21_v10, %v361_v6  ;;  %v48_v17 = vrot.slane %v21_v10, %v363_v7  ;;  %v52_v18 = vrot.slane %v21_v10, %v365_v8  ;;  %v56_v19 = vrot.slane %v21_v10, %v367_v9 }
  0x15   :  { %v60_v20 = vrot.slane %v22_v11, %v353_v2  ;;  %v64_v21 = vrot.slane %v22_v11, %v355_v3  ;;  %v68_v22 = vrot.slane %v22_v11, %v357_v4  ;;  %v72_v23 = vrot.slane %v22_v11, %v359_v5  ;;  %p322_p9 = pnand %p321_p8, %p315_p5 }
  0x16   :  { %v76_v24 = vrot.slane %v22_v11, %v361_v6  ;;  %v80_v25 = vrot.slane %v22_v11, %v363_v7  ;;  %v84_v26 = vrot.slane %v22_v11, %v365_v8  ;;  %v88_v27 = vrot.slane %v22_v11, %v367_v9 }
  0x17   :  { %v106_v28 = vsel %vm105_vm0, %v28_v12, -inf  ;;  %v107_v29 = vsel %vm105_vm0, %v32_v13, -inf  ;;  %v108_v30 = vsel %vm105_vm0, %v36_v14, -inf  ;;  %v109_v31 = vsel %vm105_vm0, %v40_v15, -inf }
  0x18   :  { %v110_v32 = vsel %vm105_vm0, %v44_v16, -inf  ;;  %v112_v33 = vsel %vm105_vm0, %v48_v17, -inf  ;;  %v114_v34 = vsel %vm105_vm0, %v52_v18, -inf  ;;  %v116_v35 = vsel %vm105_vm0, %v56_v19, -inf }
  0x19   :  { %v111_v36 = vmax.f32 %v106_v28, %v110_v32  ;;  %v113_v37 = vmax.f32 %v107_v29, %v112_v33  ;;  %v115_v38 = vmax.f32 %v108_v30, %v114_v34  ;;  %v117_v39 = vmax.f32 %v109_v31, %v116_v35 }
  0x1a   :  { %v118_v40 = vsel %vm105_vm0, %v60_v20, -inf  ;;  %v120_v41 = vsel %vm105_vm0, %v64_v21, -inf  ;;  %v122_v42 = vsel %vm105_vm0, %v68_v22, -inf  ;;  %v124_v43 = vsel %vm105_vm0, %v72_v23, -inf }
  0x1b   :  { %v119_v44 = vmax.f32 %v111_v36, %v118_v40  ;;  %v121_v45 = vmax.f32 %v113_v37, %v120_v41  ;;  %v123_v46 = vmax.f32 %v115_v38, %v122_v42  ;;  %v125_v47 = vmax.f32 %v117_v39, %v124_v43 }
  0x1c   :  { %v126_v48 = vsel %vm105_vm0, %v76_v24, -inf  ;;  %v128_v49 = vsel %vm105_vm0, %v80_v25, -inf  ;;  %v130_v50 = vsel %vm105_vm0, %v84_v26, -inf  ;;  %v132_v51 = vsel %vm105_vm0, %v88_v27, -inf }
  0x1d   :  { %v127_v52 = vmax.f32 %v119_v44, %v126_v48  ;;  %v129_v53 = vmax.f32 %v121_v45, %v128_v49  ;;  %v131_v54 = vmax.f32 %v123_v46, %v130_v50  ;;  %v133_v55 = vmax.f32 %v125_v47, %v132_v51 }
  0x1f   :  { %v134_v56 = vmax.f32 %v127_v52, %v129_v53  ;;  %v135_v57 = vmax.f32 %v131_v54, %v133_v55 }
  0x21   :  { %v136_v58 = vmax.f32 %v134_v56, %v135_v57 }
  0x23   :  { %137 = vmax.xlane.f32.xlu0 %v136_v58 }
  0xac   :  { %v401_v59 = vpop.xlane.xlu0 %137 }
  0xad   :  { %v143_v60 = vrot.slane %v401_v59, %v353_v2 }
  0xaf   :  { %v145_v61 = vsub.f32 %v21_v10, %v143_v60  ;;  %v146_v63 = vsub.f32 %v22_v11, %v143_v60 }
  0xb1   :  { %v147_v62 = vmul.f32 1.442695, %v145_v61  ;;  %v149_v0 = vmul.f32 1.442695, %v146_v63 }
  0xb3   :  { %288 = vpow2.f32 %v147_v62 }
  0xb4   :  { %290 = vpow2.f32 %v149_v0 }
  0xc0   :  { %v289_v1 = vpop.eup %288 }
  0xc1   :  { %v156_v12 = vrot.slane %v289_v1, %v353_v2  ;;  %v160_v13 = vrot.slane %v289_v1, %v355_v3  ;;  %v164_v14 = vrot.slane %v289_v1, %v357_v4  ;;  %v168_v15 = vrot.slane %v289_v1, %v359_v5  ;;  %v291_v25 = vpop.eup %290 }
  0xc2   :  { %v172_v10 = vrot.slane %v289_v1, %v361_v6  ;;  %v176_v20 = vrot.slane %v289_v1, %v363_v7  ;;  %v180_v23 = vrot.slane %v289_v1, %v365_v8  ;;  %v184_v27 = vrot.slane %v289_v1, %v367_v9 }
  0xc3   :  { %v233_v16 = vsel %vm105_vm0, %v156_v12, 0.0  ;;  %v234_v17 = vsel %vm105_vm0, %v160_v13, 0.0  ;;  %v236_v11 = vsel %vm105_vm0, %v164_v14, 0.0  ;;  %v238_v21 = vsel %vm105_vm0, %v168_v15, 0.0 }
  0xc4   :  { %v235_v18 = vadd.f32 %v234_v17, %v233_v16  ;;  %v240_v24 = vsel %vm105_vm0, %v172_v10, 0.0  ;;  %v242_v28 = vsel %vm105_vm0, %v176_v20, 0.0  ;;  %v188_v30 = vrot.slane %v291_v25, %v353_v2 }
  0xc5   :  { %v244_v31 = vsel %vm105_vm0, %v180_v23, 0.0  ;;  %v192_v33 = vrot.slane %v291_v25, %v355_v3  ;;  %v246_v34 = vsel %vm105_vm0, %v184_v27, 0.0  ;;  %v196_v36 = vrot.slane %v291_v25, %v357_v4 }
  0xc6   :  { %v237_v19 = vadd.f32 %v236_v11, %v235_v18  ;;  %v248_v37 = vsel %vm105_vm0, %v188_v30, 0.0  ;;  %v200_v39 = vrot.slane %v291_v25, %v359_v5  ;;  %v204_v2 = vrot.slane %v291_v25, %v361_v6 }
  0xc7   :  { %v250_v40 = vsel %vm105_vm0, %v192_v33, 0.0  ;;  %v252_v42 = vsel %vm105_vm0, %v196_v36, 0.0  ;;  %v208_v3 = vrot.slane %v291_v25, %v363_v7  ;;  %v212_v4 = vrot.slane %v291_v25, %v365_v8 }
  0xc8   :  { %v239_v22 = vadd.f32 %v238_v21, %v237_v19  ;;  %v254_v44 = vsel %vm105_vm0, %v200_v39, 0.0  ;;  %v256_v46 = vsel %vm105_vm0, %v204_v2, 0.0  ;;  %v216_v5 = vrot.slane %v291_v25, %v367_v9 }
  0xc9   :  { %v258_v48 = vsel %vm105_vm0, %v208_v3, 0.0  ;;  %v260_v6 = vsel %vm105_vm0, %v212_v4, 0.0 }
  0xca   :  { %v241_v26 = vadd.f32 %v240_v24, %v239_v22  ;;  %v262_v51 = vsel %vm105_vm0, %v216_v5, 0.0 }
  0xcc   :  { %v243_v29 = vadd.f32 %v242_v28, %v241_v26 }
  0xce   :  { %v245_v32 = vadd.f32 %v244_v31, %v243_v29 }
  0xd0   :  { %v247_v35 = vadd.f32 %v246_v34, %v245_v32 }
  0xd2   :  { %v249_v38 = vadd.f32 %v248_v37, %v247_v35 }
  0xd4   :  { %v251_v41 = vadd.f32 %v250_v40, %v249_v38 }
  0xd6   :  { %v253_v43 = vadd.f32 %v252_v42, %v251_v41 }
  0xd8   :  { %v255_v45 = vadd.f32 %v254_v44, %v253_v43 }
  0xda   :  { %v257_v47 = vadd.f32 %v256_v46, %v255_v45 }
  0xdc   :  { %v259_v49 = vadd.f32 %v258_v48, %v257_v47 }
  0xde   :  { %v261_v50 = vadd.f32 %v260_v6, %v259_v49 }
  0xe0   :  { %v263_v52 = vadd.f32 %v262_v51, %v261_v50 }
  0xe2   :  { %264 = vadd.xlane.f32.xlu0 %v263_v52 }
 0x16b   :  { %v265_v7 = vpop.xlane.xlu0 %264 }
 0x16c   :  { %292 = vlog2.f32 %v265_v7 }
 0x179   :  { %v293_v53 = vpop.eup %292 }
 0x17a   :  { %v267_v8 = vmul.f32 0.6931472, %v293_v53 }
 0x17c   :  { %v268_v54 = vadd.f32 %v267_v8, %v401_v59 }
 0x17e   :  { %270 = vst.msk [vmem:[#allocation5] sm:$0x1] %vm269_vm1, %v268_v54 }
 0x17f   :  { %325 = shalt.err (!%p322_p9)
}
 0x180   :  { %280 = dma.vmem_to_hbm [thread:$0]  %s278_s11, 16, %s442_s1, [#allocation4]  }
 0x181   :  { %336 = dma.done.wait [#allocation4], 16  }
 0x182   :  { %337 = vsyncadd [#allocation4], 4294967280 }
 0x183   :  { %284 = vsyncpa [#allocation3], 1 }
 0x184   :  { %285 = vsyncpa [#allocation4], 1 }

</bundles_post_ra>
